<compile_context>
chip_gen: v5e
topology: v5e:2x2
jax: 0.10.0
libtpu: 0.0.40
codegen_flags: <defaults>
</compile_context>

<pallas_src>
import functools

import jax
import jax.numpy as jnp
from jax import lax
from jax.experimental import pallas as pl
from jax.experimental.pallas import tpu as pltpu

_MB = 1024 * 1024
_MAX_TILE_ROWS = 4096
_MAX_TILE_COLS = 65536


def _ceil_div(a, b):
    return -(-a // b)


def _round_up(a, m):
    return _ceil_div(a, m) * m


def _round_down(a, m):
    return (a // m) * m


def _lane_pad(n):
    return _round_up(max(int(n), 1), 128)


def _vmem_plan():
    """Generation-aware scoped-VMEM limit and the budget tiles are sized to."""
    phys = 64 * _MB                       # conservative fallback (v7x physical)
    try:
        info = pltpu.get_tpu_info()
        cap = int(getattr(info, "vmem_capacity_bytes", 0) or 0)
        if cap > 0:
            phys = cap
    except Exception:
        pass
    limit = min(96 * _MB, max(32 * _MB, (phys * 3) // 4))  # 96M on 128M parts, 48M on v7x
    budget = max(16 * _MB, (limit * 2) // 3)                # ~64M / ~32M
    return limit, budget


# ---------------------------------------------------------------------------
# Tile planners
# ---------------------------------------------------------------------------
def _plan_rows(num_rows, hw, per_elem, extra_row, budget, row_gran):
    """Tile plan for a (num_rows, hw) slab, rows on the parallel grid axis.

    Returns (tile_rows, tile_cols, n_col_steps).  tile_cols == hw (full width)
    unless even `row_gran` full-width rows exceed the budget, in which case
    the lane axis is tiled too (tile_cols a multiple of 128)."""
    hw_pad = _lane_pad(hw)
    per_row_full = hw_pad * per_elem + extra_row
    rows_fit = budget // max(per_row_full, 1)
    if rows_fit >= min(num_rows, row_gran):
        if num_rows <= row_gran:
            return num_rows, hw, 1
        # aim for >= 4 row steps so megacore / pipelining have work to overlap
        target = max(row_gran, _round_down(_ceil_div(num_rows, 4), row_gran))
        tr = min(_round_down(rows_fit, row_gran), target, _MAX_TILE_ROWS)
        tr = max(tr, row_gran)
        return tr, hw, 1
    # very large spatial size: tile the lane (H*W) axis as well
    tr = min(num_rows, row_gran)
    tc = _round_down(budget // max(tr * per_elem, 1), 128)
    tc = max(128, min(tc, _MAX_TILE_COLS, _lane_pad(hw)))
    return tr, tc, _ceil_div(hw, tc)


def _plan_cols(num_rows, width, per_elem, extra_col, budget):
    """Column-tile plan for a (num_rows, width) slab with all rows resident."""
    rows_pad = _round_up(num_rows, 8)
    per_col = rows_pad * per_elem + extra_col
    cols_fit = budget // max(per_col, 1)
    if width <= 128 or cols_fit >= width:
        if width > 4 * 128 and cols_fit >= width:
            # keep >= 4 grid steps for pipelining / megacore sharding
            return max(128, _round_down(_ceil_div(width, 4), 128))
        return width
    return max(128, _round_down(cols_fit, 128))


# ---------------------------------------------------------------------------
# Pass 1 kernels: partial sums of dy and dy*x (f32), lane-major outputs.
# ---------------------------------------------------------------------------
def _p1_rows_kernel(dy_ref, x_ref, out_ref, *, mask_cols, hw, tile_cols):
    # (N*C, H*W) layout: per-row sums over the lane axis, accumulated over
    # the (optional) column grid axis; out block is (2, tile_rows).
    j = pl.program_id(1)

    @pl.when(j == 0)
    def _():
        out_ref[...] = jnp.zeros_like(out_ref)

    dy = dy_ref[...].astype(jnp.float32)
    x = x_ref[...].astype(jnp.float32)
    if mask_cols:
        col = lax.broadcasted_iota(jnp.int32, dy.shape, 1) + j * tile_cols
        valid = col < hw
        dy = jnp.where(valid, dy, 0.0)
        x = jnp.where(valid, x, 0.0)
    out_ref[0:1, :] += jnp.sum(dy, axis=1)[None, :]
    out_ref[1:2, :] += jnp.sum(dy * x, axis=1)[None, :]


def _p1_cols_kernel(dy_ref, x_ref, out_ref):
    # (N, C*H*W) lane-packed layout: per-column sums over the N rows.
    dy = dy_ref[...].astype(jnp.float32)
    x = x_ref[...].astype(jnp.float32)
    out_ref[0:1, :] = jnp.sum(dy, axis=0, keepdims=True)
    out_ref[1:2, :] = jnp.sum(dy * x, axis=0, keepdims=True)


# ---------------------------------------------------------------------------
# Pass 2 kernels: grad_input = c1*dy + c5*x + c4
# ---------------------------------------------------------------------------
def _p2_rows_kernel(dy_ref, x_ref, coef_ref, gi_ref):
    dy = dy_ref[...].astype(jnp.float32)
    x = x_ref[...].astype(jnp.float32)
    coef = coef_ref[...]                                    # (T, 3) f32
    gi_ref[...] = (coef[:, 0:1] * dy + coef[:, 1:2] * x
                   + coef[:, 2:3]).astype(gi_ref.dtype)


def _p2_cols_kernel(dy_ref, x_ref, coef_ref, gi_ref):
    dy = dy_ref[...].astype(jnp.float32)
    x = x_ref[...].astype(jnp.float32)
    coef = coef_ref[...]                                    # (3, Tc) f32
    gi_ref[...] = (coef[0:1, :] * dy + coef[1:2, :] * x
                   + coef[2:3, :]).astype(gi_ref.dtype)


# ---------------------------------------------------------------------------
# Driver
# ---------------------------------------------------------------------------
def _bn_backward_impl(grad_out, x, weight, mean, invstd, *, train=True,
                      output_mask=(True, True, True),
                      vmem_budget=None, force_layout=None):
    """grad_out/x: (N, C, H, W).  mean/invstd: (C,).  Returns (gi, gw, gb)."""
    N, C, H, W = x.shape
    HW = H * W
    R = N * C
    M = N * HW

    itemsize = max(x.dtype.itemsize, grad_out.dtype.itemsize)
    out_itemsize = x.dtype.itemsize
    sub = 8 * max(1, 4 // x.dtype.itemsize)        # sublane granularity (8/16/32)

    vmem_limit, budget = _vmem_plan()
    if vmem_budget is not None:
        budget = int(vmem_budget)

    # Per-element VMEM byte charges (double-buffered inputs + f32 temporaries).
    per1 = 4 * itemsize + 12                       # pass 1: dy + x
    per2 = 4 * itemsize + 2 * out_itemsize + 12    # pass 2: dy + x + gi

    mean_f = jnp.asarray(mean, jnp.float32).reshape(C)
    invstd_f = jnp.asarray(invstd, jnp.float32).reshape(C)
    w_f = (jnp.ones((C,), jnp.float32) if weight is None
           else jnp.asarray(weight, jnp.float32).reshape(C))

    # Layout choice: lane-pack small spatial maps as (N, C*H*W) so all blocks
    # and stores are lane-dense; otherwise stream (N*C, H*W) rows.
    packed = HW < 128
    if _round_up(N, 8) * per2 * 128 > budget:
        packed = False                             # batch too large to keep resident
    if force_layout == "rows":
        packed = False
    elif force_layout == "packed":
        packed = True

    need_stats = output_mask[1] or output_mask[2] or (train and output_mask[0])

    def cparams(sem):
        return pltpu.CompilerParams(dimension_semantics=sem,
                                    vmem_limit_bytes=vmem_limit)

    sum_dy = jnp.zeros((C,), jnp.float32)
    sum_dy_x = jnp.zeros((C,), jnp.float32)

    if packed:
        Wc = C * HW
        dy2 = grad_out.reshape(N, Wc)
        x2 = x.reshape(N, Wc)
        if need_stats:
            tc1 = _plan_cols(N, Wc, per1, 64, budget)
            colsums = pl.pallas_call(
                _p1_cols_kernel,
                out_shape=jax.ShapeDtypeStruct((2, Wc), jnp.float32),
                grid_spec=pltpu.PrefetchScalarGridSpec(
                    num_scalar_prefetch=0,
                    grid=(_ceil_div(Wc, tc1),),
                    in_specs=[pl.BlockSpec((N, tc1), lambda j: (0, j)),
                              pl.BlockSpec((N, tc1), lambda j: (0, j))],
                    out_specs=pl.BlockSpec((2, tc1), lambda j: (0, j))),
                compiler_params=cparams(("parallel",)),
            )(dy2, x2)
            per_c = colsums.reshape(2, C, HW)
            sum_dy = jnp.sum(per_c[0], axis=1)
            sum_dy_x = jnp.sum(per_c[1], axis=1)
    else:
        dy2 = grad_out.reshape(R, HW)
        x2 = x.reshape(R, HW)
        if need_stats:
            tr1, tc1, nc1 = _plan_rows(R, HW, per1, 64, budget, 128)
            mask1 = (HW % tc1) != 0
            k1 = functools.partial(_p1_rows_kernel, mask_cols=mask1,
                                   hw=HW, tile_cols=tc1)
            rowsums = pl.pallas_call(
                k1,
                out_shape=jax.ShapeDtypeStruct((2, R), jnp.float32),
                grid_spec=pltpu.PrefetchScalarGridSpec(
                    num_scalar_prefetch=0,
                    grid=(_ceil_div(R, tr1), nc1),
                    in_specs=[pl.BlockSpec((tr1, tc1), lambda i, j: (i, j)),
                              pl.BlockSpec((tr1, tc1), lambda i, j: (i, j))],
                    out_specs=pl.BlockSpec((2, tr1), lambda i, j: (0, i))),
                compiler_params=cparams(("parallel", "arbitrary")),
            )(dy2, x2)
            per_nc = rowsums.reshape(2, N, C)
            sum_dy = jnp.sum(per_nc[0], axis=0)
            sum_dy_x = jnp.sum(per_nc[1], axis=0)

    # Tiny per-channel finalize in plain JAX (f32).
    sum_dy_xmu = sum_dy_x - mean_f * sum_dy
    grad_bias = sum_dy
    grad_weight = sum_dy_xmu * invstd_f

    grad_input = None
    if output_mask[0]:
        inv_m = 1.0 / float(M)
        c1 = w_f * invstd_f
        if train:
            c5 = -(c1 * invstd_f * invstd_f) * (sum_dy_xmu * inv_m)
            c4 = -(c5 * mean_f) - c1 * (sum_dy * inv_m)
        else:
            c5 = jnp.zeros((C,), jnp.float32)
            c4 = jnp.zeros((C,), jnp.float32)

        if packed:
            coef_cols = jnp.repeat(jnp.stack([c1, c5, c4], axis=0), HW, axis=1)
            tc2 = _plan_cols(N, Wc, per2, 128, budget)
            gi2 = pl.pallas_call(
                _p2_cols_kernel,
                out_shape=jax.ShapeDtypeStruct((N, Wc), x.dtype),
                grid_spec=pltpu.PrefetchScalarGridSpec(
                    num_scalar_prefetch=0,
                    grid=(_ceil_div(Wc, tc2),),
                    in_specs=[pl.BlockSpec((N, tc2), lambda j: (0, j)),
                              pl.BlockSpec((N, tc2), lambda j: (0, j)),
                              pl.BlockSpec((3, tc2), lambda j: (0, j))],
                    out_specs=pl.BlockSpec((N, tc2), lambda j: (0, j))),
                compiler_params=cparams(("parallel",)),
            )(dy2, x2, coef_cols)
            grad_input = gi2.reshape(N, C, H, W)
        else:
            coef_rows = jnp.tile(jnp.stack([c1, c5, c4], axis=-1), (N, 1))   # (R, 3)
            tr2, tc2, nc2 = _plan_rows(R, HW, per2, 1024 + 64, budget, sub)
            gi2 = pl.pallas_call(
                _p2_rows_kernel,
                out_shape=jax.ShapeDtypeStruct((R, HW), x.dtype),
                grid_spec=pltpu.PrefetchScalarGridSpec(
                    num_scalar_prefetch=0,
                    grid=(_ceil_div(R, tr2), nc2),
                    in_specs=[pl.BlockSpec((tr2, tc2), lambda i, j: (i, j)),
                              pl.BlockSpec((tr2, tc2), lambda i, j: (i, j)),
                              pl.BlockSpec((tr2, 3), lambda i, j: (i, 0))],
                    out_specs=pl.BlockSpec((tr2, tc2), lambda i, j: (i, j))),
                compiler_params=cparams(("parallel", "parallel")),
            )(dy2, x2, coef_rows)
            grad_input = gi2.reshape(N, C, H, W)

    return grad_input, grad_weight, grad_bias


def aten_native_batch_norm_backward(grad_out, x, weight, running_mean,
                                    running_var, save_mean, save_invstd,
                                    train, eps,
                                    output_mask=(True, True, True)):
    """Mirrors aten.native_batch_norm_backward.default."""
    if train:
        mean, invstd = save_mean, save_invstd
    else:
        mean = running_mean
        invstd = 1.0 / jnp.sqrt(jnp.asarray(running_var, jnp.float32) + eps)
    gi, gw, gb = _bn_backward_impl(grad_out, x, weight, mean, invstd,
                                   train=bool(train),
                                   output_mask=tuple(output_mask))
    return (gi if output_mask[0] else None,
            gw if output_mask[1] else None,
            gb if output_mask[2] else None)


def _reference(grad_out, x, weight, save_mean, save_invstd):
    """Pure-JAX reference for training-mode batch-norm backward (NCHW)."""
    N, C, H, W = x.shape
    M = N * H * W
    dy = grad_out.astype(jnp.float32)
    xf = x.astype(jnp.float32)
    mean = save_mean.reshape(1, C, 1, 1).astype(jnp.float32)
    invstd = save_invstd.reshape(1, C, 1, 1).astype(jnp.float32)
    w = (jnp.ones((C,), jnp.float32) if weight is None
         else weight.astype(jnp.float32)).reshape(1, C, 1, 1)
    xmu = xf - mean
    sum_dy = jnp.sum(dy, axis=(0, 2, 3))
    sum_dy_xmu = jnp.sum(dy * xmu, axis=(0, 2, 3))
    grad_bias = sum_dy
    grad_weight = sum_dy_xmu * save_invstd.astype(jnp.float32)
    gi = (w * invstd) * (dy - sum_dy.reshape(1, C, 1, 1) / M
                         - xmu * invstd * invstd * sum_dy_xmu.reshape(1, C, 1, 1) / M)
    return gi.astype(x.dtype), grad_weight, grad_bias


if __name__ == "__main__":
    key = jax.random.PRNGKey(0)
    eps = 1e-5

    def _make(N, C, H, W, dtype, salt):
        k1, k2, k3 = jax.random.split(jax.random.fold_in(key, salt), 3)
        x = jax.random.normal(k1, (N, C, H, W), dtype=jnp.float32).astype(dtype)
        dy = jax.random.normal(k2, (N, C, H, W), dtype=jnp.float32).astype(dtype)
        w = jax.random.normal(k3, (C,), dtype=jnp.float32) * 0.1 + 1.0
        m = jnp.mean(x.astype(jnp.float32), axis=(0, 2, 3))
        istd = 1.0 / jnp.sqrt(jnp.var(x.astype(jnp.float32), axis=(0, 2, 3)) + eps)
        return x, dy, w, m, istd

    def _check(gi, gw, gb, x, dy, w, m, istd, dtype):
        gi_r, gw_r, gb_r = _reference(dy, x, w, m, istd)
        tol = 1e-4 if dtype == jnp.float32 else 2e-2
        assert jnp.allclose(gi.astype(jnp.float32), gi_r.astype(jnp.float32),
                            atol=tol, rtol=tol)
        assert jnp.allclose(gw, gw_r, atol=1e-3, rtol=1e-3)
        assert jnp.allclose(gb, gb_r, atol=1e-3, rtol=1e-3)

    # ---- 1: EfficientNet-like small shape, aten-style call, packed path ----
    x, dy, w, m, istd = _make(2, 32, 8, 8, jnp.float32, 1)
    rm = jnp.zeros((32,), jnp.float32)
    rv = jnp.ones((32,), jnp.float32)
    gi, gw, gb = aten_native_batch_norm_backward(dy, x, w, rm, rv, m, istd,
                                                 True, eps, (True, True, True))
    jax.block_until_ready((gi, gw, gb))
    _check(gi, gw, gb, x, dy, w, m, istd, jnp.float32)

    # ---- 2: 7x7 spatial, ragged lane-packed columns ----
    x, dy, w, m, istd = _make(3, 24, 7, 7, jnp.float32, 2)
    gi, gw, gb = _bn_backward_impl(dy, x, w, m, istd, train=True)
    jax.block_until_ready((gi, gw, gb))
    _check(gi, gw, gb, x, dy, w, m, istd, jnp.float32)

    # ---- 3: H*W >= 128 -> row-slab path ----
    x, dy, w, m, istd = _make(2, 16, 16, 16, jnp.float32, 3)
    gi, gw, gb = _bn_backward_impl(dy, x, w, m, istd, train=True)
    jax.block_until_ready((gi, gw, gb))
    _check(gi, gw, gb, x, dy, w, m, istd, jnp.float32)

    # ---- 4: forced tiny budget -> lane-axis tiling + in-kernel masking ----
    x, dy, w, m, istd = _make(2, 8, 20, 13, jnp.float32, 4)
    gi, gw, gb = _bn_backward_impl(dy, x, w, m, istd, train=True,
                                   force_layout="rows", vmem_budget=64 * 1024)
    jax.block_until_ready((gi, gw, gb))
    _check(gi, gw, gb, x, dy, w, m, istd, jnp.float32)

    # ---- 5: bf16 inputs, lane-packed path, dtype-aware tiling ----
    x, dy, w, m, istd = _make(8, 16, 8, 8, jnp.bfloat16, 5)
    gi, gw, gb = _bn_backward_impl(dy, x, w, m, istd, train=True)
    jax.block_until_ready((gi, gw, gb))
    _check(gi, gw, gb, x, dy, w, m, istd, jnp.bfloat16)

    print("KERNEL_OK")
</pallas_src>

<mosaic_0001>
module attributes {stable_mosaic.version = 11 : i64} {
  func.func @_p1_cols_kernel(%arg0: i32, %arg1: memref<2x512xf32, #tpu.memory_space<vmem>>, %arg2: memref<2x512xf32, #tpu.memory_space<vmem>>, %arg3: memref<2x512xf32, #tpu.memory_space<vmem>>) attributes {dimension_semantics = [#tpu.dimension_semantics<parallel>], iteration_bounds = array<i64: 4>, scalar_prefetch = 0 : i64, scratch_operands = 0 : i64, tpu.core_type = #tpu.core_type<tc>, window_params = [{transform_indices = @transform_0, window_bounds = array<i64: 2, 512>}, {transform_indices = @transform_1, window_bounds = array<i64: 2, 512>}, {transform_indices = @transform_2, window_bounds = array<i64: 2, 512>}]} {
    %c0 = arith.constant 0 : index
    %c0_0 = arith.constant 0 : index
    %0 = vector.load %arg1[%c0, %c0_0] : memref<2x512xf32, #tpu.memory_space<vmem>>, vector<2x512xf32>
    %c0_1 = arith.constant 0 : index
    %c0_2 = arith.constant 0 : index
    %1 = vector.load %arg2[%c0_1, %c0_2] : memref<2x512xf32, #tpu.memory_space<vmem>>, vector<2x512xf32>
    %cst = arith.constant dense<0.000000e+00> : vector<512xf32>
    %2 = vector.multi_reduction <add>, %0, %cst [0] : vector<2x512xf32> to vector<512xf32>
    %3 = vector.shape_cast %2 : vector<512xf32> to vector<1x512xf32>
    %c0_3 = arith.constant 0 : index
    %c0_4 = arith.constant 0 : index
    %4 = vector.load %arg3[%c0_3, %c0_4] : memref<2x512xf32, #tpu.memory_space<vmem>>, vector<1x512xf32>
    tpu.vector_store %arg3[%c0_3, %c0_4], %3 {strides = array<i32>} : memref<2x512xf32, #tpu.memory_space<vmem>>, vector<1x512xf32>,
    %5 = arith.mulf %0, %1 : vector<2x512xf32>
    %cst_5 = arith.constant dense<0.000000e+00> : vector<512xf32>
    %6 = vector.multi_reduction <add>, %5, %cst_5 [0] : vector<2x512xf32> to vector<512xf32>
    %7 = vector.shape_cast %6 : vector<512xf32> to vector<1x512xf32>
    %c1 = arith.constant 1 : index
    %c0_6 = arith.constant 0 : index
    %8 = vector.load %arg3[%c1, %c0_6] : memref<2x512xf32, #tpu.memory_space<vmem>>, vector<1x512xf32>
    tpu.vector_store %arg3[%c1, %c0_6], %7 {strides = array<i32>} : memref<2x512xf32, #tpu.memory_space<vmem>>, vector<1x512xf32>,
    return
  }
  func.func @transform_0(%arg0: i32) -> (i32, i32) {
    %c0_i32 = arith.constant 0 : i32
    %c0_i32_0 = arith.constant 0 : i32
    return %c0_i32, %arg0 : i32, i32
  }
  func.func @transform_1(%arg0: i32) -> (i32, i32) {
    %c0_i32 = arith.constant 0 : i32
    %c0_i32_0 = arith.constant 0 : i32
    return %c0_i32, %arg0 : i32, i32
  }
  func.func @transform_2(%arg0: i32) -> (i32, i32) {
    %c0_i32 = arith.constant 0 : i32
    %c0_i32_0 = arith.constant 0 : i32
    return %c0_i32, %arg0 : i32, i32
  }
}

</mosaic_0001>

<bundles_post_ra>
// kernel: tpu_custom_call.1
= control target key start
LH: loop header
LB: loop body
LE: loop exit
PB: predicated region body
PF: predicated region fallthrough
CT: control target
= control target key end

     0   :  { %7 = vsyncpa [#allocation3], 0  ;;  %s831_s0 = inlined_call_operand.hbm [shape: f32[2,2048], index: 0, kind: input, shape index: {}]   ;;  %s832_s1 = inlined_call_operand.hbm [shape: f32[2,2048], index: 1, kind: input, shape index: {}]   ;;  %s833_s2 = inlined_call_operand.hbm [shape: f32[2,2048], index: 2, kind: output, shape index: {}]  }
   0x1   :  { %9 = vsyncpa [#allocation3 + $0x1], 0 }
   0x2   :  { %10 = vsyncpa [#allocation6], 0 }
   0x3   :  { %12 = vsyncpa [#allocation6 + $0x1], 0 }
   0x4   :  { %13 = vsyncpa [#allocation4], 0 }
   0x5   :  { %15 = vsyncpa [#allocation4 + $0x1], 0  ;;  %s646_s9 = smov 0   ;;  %s648_s10 = smov 0  }
   0x6   :  { %s650_s11 = smov 0   ;;  %s652_s12 = smov 0  }
   0x7 LB: > { %s667_s13 = sadd.s32 4294967295, %s629_s12   ;;  %s426_s14 = sadd.s32 4294967294, %s629_s12   ;;  %s629_s12 = sphi %s652_s12, %s845_s12   ;;  %s625_s11 = sphi %s650_s11, %s844_s11   ;;  %s621_s10 = sphi %s648_s10, %s843_s10   ;;  %s617_s9 = sphi %s646_s9, %s842_s9  }
   0x8   : > { %s671_s15 = sadd.s32 1, %s629_s12   ;;  %s28_s16 = sadd.s32 1, %s625_s11 }
   0x9   : > { %s25_s17 = ssub.s32 %s629_s12, %s671_s15  ;;  %p35_p0 = scmp.ne.s32.totalorder %s625_s11, %s621_s10 }
   0xa   : > { %p26_p1 = scmp.eq.s32.totalorder %s25_s17, 0  ;;  %p36_p2 = scmp.eq.s32.totalorder %s629_s12, 0 }
   0xb   : > { %p41_p3 = scmp.ne.s32.totalorder %s621_s10, %s617_s9  ;;  %p42_p4 = scmp.eq.s32.totalorder %s667_s13, 0 }
   0xc   : > { %s683_s18 = scalar_select %p26_p1, %s625_s11, %s28_s16  }
   0xd   : > { %p685_p5 = por %p36_p2, %p35_p0  ;;  %p689_p6 = por %p42_p4, %p41_p3 }
   0xe   : > { %p91_p7 = scmp.eq.s32.totalorder %s667_s13, 3  ;;  %p97_p8 = scmp.eq.s32.totalorder %s426_s14, 3 }
   0xf   : > { %p465_p9 = scmp.lt.s32.totalorder %s629_s12, 4  ;;  %s704_s23 = sand.u32 1, %s625_s11  }
  0x10   : > { %p695_p10 = por %p91_p7, %p35_p0  ;;  %p699_p11 = por %p97_p8, %p41_p3 }
  0x11   : > { %s445_s24 = sshll.u32 %s629_s12, 3  ;;  %s429_s25 = sshll.u32 %s704_s23, 3 }
  0x12   : > { %s126_s28 = scalar_lea.hbm %s831_s0, %s445_s24  ;;  %s121_s30 = scalar_lea.vmem [#allocation2], %s429_s25 }
  0x13   : > { %s128_s29 = sshll.u32 %s126_s28, 4  ;;  %s130_s3 = sshll.u32 %s121_s30, 4  ;;  %s129_s29 = int_to_ptr.hbm [resolvable:$true] %s128_s29  ;;  %s131_s3 = int_to_ptr.vmem [resolvable:$true] %s130_s3 }
  0x14   : > { %p713_p12 = pnand %p465_p9, %p685_p5  ;;  %p435_p13 = scmp.ge.s32.totalorder %s629_s12, 1 }
  0x15   : > { %p155_p0 = scmp.lt.s32.totalorder %s629_s12, 5  ;;  %s118_s5 = scalar_lea.sflag [#allocation3], %s704_s23 }
  0x16   : > { %s499_s6 = sshra.s32 %s129_s29, 4  ;;  %p503_p2 = pneg %p713_p12  ;;  %s500_s6 = int_to_ptr.hbm [resolvable:$true] %s499_s6 }
  0x17   : > { %s501_s7 = scalar_lea.hbm %s500_s6, 8  ;;  %s506_s16 = scalar_lea.hbm %s831_s0, 32 }
  0x18   : > { %p502_p1 = scmp.ne.s32.totalorder %s500_s6, %s501_s7  ;;  %p507_p5 = scmp.lt.s32.totalorder %s500_s6, %s831_s0 }
  0x19   : > { %p508_p7 = scmp.lt.s32.totalorder %s506_s16, %s501_s7 }
  0x1a   : > { %p504_p3 = pnand %p503_p2, %p502_p1 }
  0x1b   : > { %p509_p8 = por %p508_p7, %p507_p5 }
  0x1c   : > { %p505_p4 = pneg %p504_p3 }
  0x1e   : > { %p510_p9 = pnand %p509_p8, %p505_p4 }
  0x20   : > { %513 = shalt.err (!%p510_p9)
}
  0x21   : > { %457 = dma.hbm_to_vmem [thread:$0]  (!%p713_p12), %s129_s29, 128, %s131_s3, %s118_s5  }
  0x22   : > { %p737_p1 = pnand %p435_p13, %p155_p0  ;;  %s146_s30 = scalar_lea.hbm %s832_s1, %s445_s24 }
  0x23   : > { %s148_s6 = sshll.u32 %s146_s30, 4  ;;  %s141_s7 = scalar_lea.vmem [#allocation5], %s429_s25  ;;  %s149_s6 = int_to_ptr.hbm [resolvable:$true] %s148_s6 }
  0x24   : > { %s150_s8 = sshll.u32 %s141_s7, 4  ;;  %s138_s14 = scalar_lea.sflag [#allocation6], %s704_s23  ;;  %s151_s8 = int_to_ptr.vmem [resolvable:$true] %s150_s8 }
  0x25   : > { %s529_s16 = sshra.s32 %s149_s6, 4  ;;  %s536_s5 = scalar_lea.hbm %s832_s1, 32  ;;  %s530_s16 = int_to_ptr.hbm [resolvable:$true] %s529_s16 }
  0x26   : > { %s531_s17 = scalar_lea.hbm %s530_s16, 8  ;;  %p537_p4 = scmp.lt.s32.totalorder %s530_s16, %s832_s1 }
  0x27   : > { %p532_p3 = scmp.ne.s32.totalorder %s530_s16, %s531_s17  ;;  %p538_p5 = scmp.lt.s32.totalorder %s536_s5, %s531_s17 }
  0x29   : > { %p534_p13 = pnand %p532_p3, %p503_p2  ;;  %p539_p7 = por %p538_p5, %p537_p4 }
  0x2b   : > { %p535_p0 = pneg %p534_p13 }
  0x2d   : > { %p540_p8 = pnand %p539_p7, %p535_p0 }
  0x2f   : > { %543 = shalt.err (!%p540_p8)
}
  0x30   : > { %460 = dma.hbm_to_vmem [thread:$0]  (!%p713_p12), %s149_s6, 128, %s151_s8, %s138_s14  }
  0x31   : > { %159 = sbr.rel (%p737_p1) target bundleno = 98 (0x62), region = 28  ;;  %s759_s23 = sand.u32 (!%p737_p1), 1, %s621_s10  }
  0x32   : > { %s762_s25 = sshll.u32 (!%p737_p1), %s759_s23, 3  ;;  %s162_s27 = scalar_lea.sflag (!%p737_p1), [#allocation3], %s759_s23 }
  0x33   : > { %s165_s28 = scalar_lea.vmem (!%p737_p1), [#allocation2], %s762_s25 }
  0x36   : > { %604 = dma.done.wait (%p689_p6), %s162_s27, 128  }
  0x37   : > { %606 = vsyncadd (%p689_p6), %s162_s27, 4294967168  ;;  %s172_s4 = scalar_lea.sflag [#allocation6], %s759_s23  ;;  %s175_s26 = scalar_lea.vmem [#allocation5], %s762_s25 }
  0x38   : > { %608 = dma.done.wait (%p689_p6), %s172_s4, 128  }
  0x39   : > { %610 = vsyncadd (%p689_p6), %s172_s4, 4294967168  ;;  %v205_v0 = vld [vmem:[%s165_s28] sm:$0xff]  ;;  %v206_v1 = vld [vmem:[%s175_s26] sm:$0xff]  ;;  %vm217_vm0 = vcmask 1041408   ;;  %vm253_vm1 = vcmask 1040384   ;;  %vm255_vm2 = vcmask 1042434   ;;  %v259_v23 = vlaneseq }
  0x3a   : > { %208 = vst [vmem:[#allocation1] ss:$4 sm:$0xff] %v205_v0  ;;  %v264_v2 = vmul.f32 %v206_v1, %v205_v0  ;;  %s201_s20 = scalar_lea.vmem [#allocation7], %s762_s25  ;;  %s447_s30 = sshll.u32 %s667_s13, 3 }
  0x3b   : > { %vm784_vm3 = vcmp.lt.s32.totalorder %v259_v23, 512  ;;  %s328_s8 = scalar_lea.hbm %s833_s2, %s447_s30  ;;  %s330_s14 = sshll.u32 %s201_s20, 4  ;;  %s331_s14 = int_to_ptr.vmem [resolvable:$true] %s330_s14 }
  0x3c   : > { %s332_s16 = sshll.u32 %s328_s8, 4  ;;  %s317_s13 = scalar_lea.sflag [#allocation4], %s759_s23  ;;  %s333_s16 = int_to_ptr.hbm [resolvable:$true] %s332_s16 }
  0x3d   : > { %s573_s17 = sshra.s32 %s333_s16, 4  ;;  %s579_s19 = scalar_lea.hbm %s833_s2, 32  ;;  %s574_s17 = int_to_ptr.hbm [resolvable:$true] %s573_s17 }
  0x3e   : > { %s575_s29 = scalar_lea.hbm %s574_s17, 8  ;;  %p580_p9 = scmp.lt.s32.totalorder %s574_s17, %s833_s2 }
  0x3f   : > { %p576_p6 = scmp.ne.s32.totalorder %s574_s17, %s575_s29  ;;  %p581_p1 = scmp.lt.s32.totalorder %s579_s19, %s575_s29 }
  0x41   : > { %v209_v3 = vld.sshfl [vmem:[#allocation1] sm:$0xff pattern:$0x73625140]  ;;  %v210_v4 = vld.sshfl [vmem:[#allocation1 + $0x8] sm:$0xff pattern:$0x73625140]  ;;  %p577_p12 = pnand %p576_p6, %p695_p10  ;;  %p582_p3 = por %p581_p1, %p580_p9 }
  0x42   : > { %v211_v5 = vld.sshfl [vmem:[#allocation1 + $0x10] sm:$0xff pattern:$0x73625140]  ;;  %v212_v6 = vld.sshfl [vmem:[#allocation1 + $0x18] sm:$0xff pattern:$0x73625140] }
  0x43   : > { %v218_v7 = vsel %vm217_vm0, %v209_v3, 0.0  ;;  %v225_v8 = vsel %vm217_vm0, %v210_v4, 0.0  ;;  %v232_v9 = vsel %vm217_vm0, %v211_v5, 0.0  ;;  %v239_v10 = vsel %vm217_vm0, %v212_v6, 0.0  ;;  %266 = vst [vmem:[#allocation1] ss:$4 sm:$0xff] %v264_v2  ;;  %p578_p2 = pneg %p577_p12 }
  0x44   : > { %v219_v11 = vrot.slane %v218_v7, 4  ;;  %v226_v12 = vrot.slane %v225_v8, 4  ;;  %v233_v13 = vrot.slane %v232_v9, 4  ;;  %v240_v14 = vrot.slane %v239_v10, 4 }
  0x45   : > { %p583_p13 = pnand %p582_p3, %p578_p2 }
  0x46   : > { %v220_v15 = vadd.f32 %v219_v11, %v218_v7  ;;  %v227_v16 = vadd.f32 %v226_v12, %v225_v8  ;;  %v234_v17 = vadd.f32 %v233_v13, %v232_v9  ;;  %v241_v18 = vadd.f32 %v240_v14, %v239_v10 }
  0x48   : > { %v221_v19 = vrot.slane %v220_v15, 2  ;;  %v228_v20 = vrot.slane %v227_v16, 2  ;;  %v235_v21 = vrot.slane %v234_v17, 2  ;;  %v242_v22 = vrot.slane %v241_v18, 2 }
  0x4a   : > { %v222_v24 = vadd.f32 %v221_v19, %v220_v15  ;;  %v229_v25 = vadd.f32 %v228_v20, %v227_v16  ;;  %v236_v26 = vadd.f32 %v235_v21, %v234_v17  ;;  %v243_v27 = vadd.f32 %v242_v22, %v241_v18  ;;  %v267_v28 = vld.sshfl [vmem:[#allocation1] sm:$0xff pattern:$0x73625140]  ;;  %v268_v29 = vld.sshfl [vmem:[#allocation1 + $0x8] sm:$0xff pattern:$0x73625140] }
  0x4b   : > { %v269_v30 = vld.sshfl [vmem:[#allocation1 + $0x10] sm:$0xff pattern:$0x73625140]  ;;  %v270_v31 = vld.sshfl [vmem:[#allocation1 + $0x18] sm:$0xff pattern:$0x73625140] }
  0x4c   : > { %v223_v32 = vrot.slane %v222_v24, 1  ;;  %v230_v33 = vrot.slane %v229_v25, 1  ;;  %v237_v34 = vrot.slane %v236_v26, 1  ;;  %v244_v35 = vrot.slane %v243_v27, 1 }
  0x4d   : > { %v275_v36 = vsel %vm217_vm0, %v267_v28, 0.0  ;;  %v282_v37 = vsel %vm217_vm0, %v268_v29, 0.0  ;;  %v289_v38 = vsel %vm217_vm0, %v269_v30, 0.0  ;;  %v296_v39 = vsel %vm217_vm0, %v270_v31, 0.0 }
  0x4e   : > { %v231_v40 = vadd.f32 %v230_v33, %v229_v25  ;;  %v238_v41 = vadd.f32 %v237_v34, %v236_v26  ;;  %v245_v42 = vadd.f32 %v244_v35, %v243_v27  ;;  %v276_v44 = vrot.slane %v275_v36, 4 }
  0x4f   : > { %v283_v45 = vrot.slane %v282_v37, 4  ;;  %v290_v46 = vrot.slane %v289_v38, 4  ;;  %v297_v47 = vrot.slane %v296_v39, 4  ;;  %v224_v48 = vadd.f32 %v223_v32, %v222_v24 }
  0x50   : > { %v250_v49 = vrot.slane %v231_v40, 7  ;;  %v251_v50 = vrot.slane %v238_v41, 6  ;;  %v252_v51 = vrot.slane %v245_v42, 5  ;;  %v277_v52 = vadd.f32 %v276_v44, %v275_v36 }
  0x51   : > { %v284_v53 = vadd.f32 %v283_v45, %v282_v37  ;;  %v291_v54 = vadd.f32 %v290_v46, %v289_v38  ;;  %v298_v55 = vadd.f32 %v297_v47, %v296_v39 }
  0x52   : > { %v254_v56 = vsel %vm253_vm1, %v224_v48, %v250_v49  ;;  %v256_v57 = vsel %vm255_vm2, %v251_v50, %v252_v51  ;;  %v278_v59 = vrot.slane %v277_v52, 2 }
  0x53   : > { %v257_v58 = vsel %vm217_vm0, %v254_v56, %v256_v57  ;;  %v285_v60 = vrot.slane %v284_v53, 2  ;;  %v292_v61 = vrot.slane %v291_v54, 2  ;;  %v299_v62 = vrot.slane %v298_v55, 2 }
  0x54   : > { %263 = vst.msk [vmem:[%s201_s20] ss:$2 sm:$0xf] %vm784_vm3, %v257_v58  ;;  %v279_v63 = vadd.f32 %v278_v59, %v277_v52 }
  0x55   : > { %v286_v0 = vadd.f32 %v285_v60, %v284_v53  ;;  %v293_v1 = vadd.f32 %v292_v61, %v291_v54  ;;  %v300_v2 = vadd.f32 %v299_v62, %v298_v55 }
  0x56   : > { %v280_v3 = vrot.slane %v279_v63, 1 }
  0x57   : > { %v287_v4 = vrot.slane %v286_v0, 1  ;;  %v294_v5 = vrot.slane %v293_v1, 1  ;;  %v301_v6 = vrot.slane %v300_v2, 1 }
  0x58   : > { %v281_v10 = vadd.f32 %v280_v3, %v279_v63 }
  0x59   : > { %v288_v7 = vadd.f32 %v287_v4, %v286_v0  ;;  %v295_v8 = vadd.f32 %v294_v5, %v293_v1  ;;  %v302_v9 = vadd.f32 %v301_v6, %v300_v2 }
  0x5b   : > { %v307_v11 = vrot.slane %v288_v7, 7  ;;  %v308_v12 = vrot.slane %v295_v8, 6  ;;  %v309_v13 = vrot.slane %v302_v9, 5 }
  0x5d   : > { %v310_v14 = vsel %vm253_vm1, %v281_v10, %v307_v11  ;;  %v311_v15 = vsel %vm255_vm2, %v308_v12, %v309_v13 }
  0x5e   : > { %v312_v16 = vsel %vm217_vm0, %v310_v14, %v311_v15 }
  0x5f   : > { %439 = vst.msk [vmem:[%s201_s20 + $0x1] ss:$2 sm:$0xf] %vm784_vm3, %v312_v16 }
  0x60   : > { %586 = shalt.err (!%p583_p13)
}
  0x61   : > { %452 = dma.vmem_to_hbm [thread:$0]  (%p695_p10), %s331_s14, 128, %s333_s16, %s317_s13  }
  0x62 PF: > { %p466_p0 = scmp.ge.s32.totalorder %s629_s12, 2  ;;  %s344_s23 = sand.u32 1, %s617_s9  }
  0x63   : > { %s345_s27 = scalar_lea.sflag [#allocation4], %s344_s23 }
  0x64   : > { %p462_p4 = pnand %p466_p0, %p699_p11 }
  0x66   : > { %p463_p5 = pneg %p462_p4 }
  0x68   : > { %612 = dma.done.wait (%p463_p5), %s345_s27, 128  }
  0x69   : > { %614 = vsyncadd (%p463_p5), %s345_s27, 4294967168  ;;  %p18_p7 = scmp.ge.s32.totalorder %s671_s15, 6   ;;  %s842_s9 = smov %s621_s10 }
  0x6a   : > { %s843_s10 = smov %s625_s11  ;;  %s844_s11 = smov %s683_s18 }
  0x6b   : > { %s845_s12 = smov %s671_s15  ;;  %20 = sbr.rel (!%p18_p7) target bundleno = 7 (0x7), region = 87 }
  0x70   :  { %351 = vsyncpa [#allocation3], 1 }
  0x71   :  { %353 = vsyncpa [#allocation3 + $0x1], 1 }
  0x72   :  { %354 = vsyncpa [#allocation6], 1 }
  0x73   :  { %356 = vsyncpa [#allocation6 + $0x1], 1 }
  0x74   :  { %357 = vsyncpa [#allocation4], 1 }
  0x75   :  { %359 = vsyncpa [#allocation4 + $0x1], 1 }

</bundles_post_ra>
